<compile_context>
chip_gen: v6e
topology: v6e:2x2x1
jax: 0.10.0
libtpu: 0.0.40
codegen_flags: <defaults>
</compile_context>

<pallas_src>
import jax
import jax.numpy as jnp
from jax.experimental import pallas as pl
from jax.experimental.pallas import tpu as pltpu


def _round_up(v, m):
    return (v + m - 1) // m * m


def _vmem_capacity_bytes():
    try:
        info = pltpu.get_tpu_info()
        cap = getattr(info, "vmem_capacity_bytes", None)
        if cap:
            return int(cap)
    except Exception:
        pass
    return 64 << 20      # conservative (v7x-sized) fallback


# ------------------------------- kernels ------------------------------------


def _resident_kernel(a_ref, xt_ref, w1_ref, w2_ref, w3_ref, bstk_ref,
                     pt_ref, w4_ref, b4_ref, w5_ref, b5_ref,
                     out_ref, h_ref):
    """grid = (3,): one step per GCN layer; A_hat fully resident in VMEM.

    h_ref : (C, N_pad) f32 -- transposed activations, persistent across layers.
    """
    l = pl.program_id(0)

    # ---- propagation: H_l^T = (W_l^T @ H_{l-1}^T) @ A ------------------------
    @pl.when(l == 0)
    def _():
        tmp = jnp.dot(w1_ref[...], xt_ref[...],
                      preferred_element_type=jnp.float32)
        h_ref[...] = jnp.dot(tmp.astype(jnp.bfloat16), a_ref[...],
                             preferred_element_type=jnp.float32)

    @pl.when(l == 1)
    def _():
        tmp = jnp.dot(w2_ref[...], h_ref[...].astype(jnp.bfloat16),
                      preferred_element_type=jnp.float32)
        h_ref[...] = jnp.dot(tmp.astype(jnp.bfloat16), a_ref[...],
                             preferred_element_type=jnp.float32)

    @pl.when(l == 2)
    def _():
        tmp = jnp.dot(w3_ref[...], h_ref[...].astype(jnp.bfloat16),
                      preferred_element_type=jnp.float32)
        h_ref[...] = jnp.dot(tmp.astype(jnp.bfloat16), a_ref[...],
                             preferred_element_type=jnp.float32)

    # ---- layer epilogue: bias + ReLU (no ReLU after conv3) -------------------
    hv = h_ref[...] + bstk_ref[0]
    h_ref[...] = jnp.where(l < 2, jnp.maximum(hv, 0.0), hv)

    # ---- final step: global mean pool + MLP head (still transposed) ----------
    @pl.when(l == 2)
    def _():
        g = jnp.dot(h_ref[...].astype(jnp.bfloat16), pt_ref[...],
                    preferred_element_type=jnp.float32)                   # (C, G)
        z = jnp.dot(w4_ref[...], g.astype(jnp.bfloat16),
                    preferred_element_type=jnp.float32) + b4_ref[...]     # (nhid, G)
        z = jnp.maximum(z, 0.0)
        o = jnp.dot(w5_ref[...], z.astype(jnp.bfloat16),
                    preferred_element_type=jnp.float32) + b5_ref[...]     # (nout, G)
        out_ref[...] = o.astype(out_ref.dtype)


def _streamed_kernel(a_ref, xt_ref, w1_ref, w2_ref, w3_ref, bstk_ref,
                     pt_ref, w4_ref, b4_ref, w5_ref, b5_ref,
                     out_ref, tmp_ref, h_ref):
    """grid = (3 layers, nblk A row-slabs): A_hat streamed, activations resident.

    tmp_ref : (C, N_pad) bf16 -- pre-propagation features W_l^T @ H_{l-1}^T
    h_ref   : (C, N_pad) f32  -- resident transposed activations / accumulator
    """
    l = pl.program_id(0)
    k = pl.program_id(1)
    nblk = pl.num_programs(1)
    tn = a_ref.shape[0]

    # ---- layer transition (first slab): tmp = W_l^T @ H_{l-1}^T, one store ---
    @pl.when((l == 0) & (k == 0))
    def _():
        tmp_ref[...] = jnp.dot(
            w1_ref[...], xt_ref[...],
            preferred_element_type=jnp.float32).astype(jnp.bfloat16)

    @pl.when((l == 1) & (k == 0))
    def _():
        tmp_ref[...] = jnp.dot(
            w2_ref[...], h_ref[...].astype(jnp.bfloat16),
            preferred_element_type=jnp.float32).astype(jnp.bfloat16)

    @pl.when((l == 2) & (k == 0))
    def _():
        tmp_ref[...] = jnp.dot(
            w3_ref[...], h_ref[...].astype(jnp.bfloat16),
            preferred_element_type=jnp.float32).astype(jnp.bfloat16)

    # ---- stream one A_hat slab: (C, tn) @ (tn, N_pad) -> lane-dense ----------
    start = pl.multiple_of(k * tn, tn)
    prop = jnp.dot(tmp_ref[:, pl.ds(start, tn)], a_ref[...],
                   preferred_element_type=jnp.float32)

    @pl.when(k == 0)
    def _():
        h_ref[...] = prop                 # first slab: direct write, no zeroing

    @pl.when(k > 0)
    def _():
        h_ref[...] += prop

    # ---- layer epilogue (last slab): bias + ReLU (no ReLU after conv3) -------
    @pl.when(k == nblk - 1)
    def _():
        hv = h_ref[...] + bstk_ref[0]
        h_ref[...] = jnp.where(l < 2, jnp.maximum(hv, 0.0), hv)

    # ---- final step: global mean pool + MLP head ------------------------------
    @pl.when((l == 2) & (k == nblk - 1))
    def _():
        g = jnp.dot(h_ref[...].astype(jnp.bfloat16), pt_ref[...],
                    preferred_element_type=jnp.float32)
        z = jnp.dot(w4_ref[...], g.astype(jnp.bfloat16),
                    preferred_element_type=jnp.float32) + b4_ref[...]
        z = jnp.maximum(z, 0.0)
        o = jnp.dot(w5_ref[...], z.astype(jnp.bfloat16),
                    preferred_element_type=jnp.float32) + b5_ref[...]
        out_ref[...] = o.astype(out_ref.dtype)


# ------------------------------- wrapper -------------------------------------


def graph_encoder_forward(a_hat, x, p, params, *, tile_n=256,
                          force_streaming=False):
    """a_hat: (N, N) symmetric normalized adjacency, x: (N, F), p: (G, N)."""
    w1, b1, w2, b2, w3, b3, w4, b4, w5, b5 = params
    n = a_hat.shape[0]
    f_in = x.shape[1]
    g_cnt = p.shape[0]
    c = w1.shape[1]
    nhid = w4.shape[1]
    nout = w5.shape[1]

    g_pad = _round_up(g_cnt, 128)          # lane-dense pool / head / out stores

    phys_vmem = _vmem_capacity_bytes()
    budget = int(phys_vmem * 0.85)         # headroom for compiler internals

    def _const_bytes(n_pad):
        # single-buffered residents: X^T, P^T, weights, biases, out
        return (2 * (f_in + g_pad) * n_pad
                + 2 * (c * f_in + 2 * c * c + nhid * c + nout * nhid)
                + 4 * (3 * c + nhid + nout + nout * g_pad))

    # ---- choose resident-A vs streamed-A path --------------------------------
    n_pad_r = _round_up(max(n, 128), 128)
    resident_bytes = (2 * n_pad_r * n_pad_r          # A_hat bf16, single buffer
                      + 4 * c * n_pad_r              # H scratch f32
                      + _const_bytes(n_pad_r)
                      + (2 << 20))                   # slack
    use_resident = (not force_streaming) and resident_bytes <= budget

    if use_resident:
        n_pad, tn, nblk = n_pad_r, n_pad_r, 1
        a_buffers = 1
    else:
        tn = max(128, (tile_n // 128) * 128)
        while True:
            n_pad = _round_up(max(n, tn), tn)
            nblk = n_pad // tn

            def _stream_bytes(nb):
                return (nb * tn * n_pad * 2          # A slabs (bf16)
                        + c * n_pad * (2 + 4)        # tmp bf16 + H f32
                        + _const_bytes(n_pad)
                        + (2 << 20))

            if nblk >= 3 and _stream_bytes(3) <= budget:
                a_buffers = 3                        # deeper pipeline: DMA-bound
                break
            if _stream_bytes(2) <= budget or tn == 128:
                a_buffers = 2
                break
            tn = max(128, (tn // 2) // 128 * 128)    # shrink slab and retry

    # ---- pad & transpose operands (layout plumbing outside the kernel) -------
    a_p = jnp.zeros((n_pad, n_pad), jnp.float32).at[:n, :n].set(a_hat)
    x_p = jnp.zeros((n_pad, f_in), jnp.float32).at[:n, :].set(x)
    p_p = jnp.zeros((g_pad, n_pad), jnp.float32).at[:g_cnt, :n].set(p)

    # A_hat is symmetric -> no explicit transpose needed for the (C,N) layout.
    a_bf = a_p.astype(jnp.bfloat16)                   # (N_pad, N_pad)
    xt = x_p.T.astype(jnp.bfloat16)                   # (F, N_pad)
    pt = p_p.T.astype(jnp.bfloat16)                   # (N_pad, G_pad)
    w1t = w1.T.astype(jnp.bfloat16)                   # (C, F)
    w2t = w2.T.astype(jnp.bfloat16)                   # (C, C)
    w3t = w3.T.astype(jnp.bfloat16)                   # (C, C)
    w4t = w4.T.astype(jnp.bfloat16)                   # (nhid, C)
    w5t = w5.T.astype(jnp.bfloat16)                   # (nout, nhid)
    b_stack = jnp.stack([b1, b2, b3]).reshape(3, c, 1).astype(jnp.float32)
    b4c = b4.reshape(-1, 1).astype(jnp.float32)       # (nhid, 1)
    b5c = b5.reshape(-1, 1).astype(jnp.float32)       # (nout, 1)

    def _const(shape):
        # constant block: DMA'd once, single-buffered (no useless double buffer)
        return pl.BlockSpec(shape, lambda *_: (0,) * len(shape),
                            pipeline_mode=pl.Buffered(1))

    if use_resident:
        a_spec = _const((n_pad, n_pad))
        b_spec = pl.BlockSpec((1, c, 1), lambda l: (l, 0, 0))
        grid = (3,)
        kernel = _resident_kernel
        scratch = [pltpu.VMEM((c, n_pad), jnp.float32)]          # H^T
        dim_sem = ("arbitrary",)
    else:
        a_kwargs = {}
        if a_buffers != 2:
            a_kwargs = dict(pipeline_mode=pl.Buffered(a_buffers))
        a_spec = pl.BlockSpec((tn, n_pad), lambda l, k: (k, 0), **a_kwargs)
        b_spec = pl.BlockSpec((1, c, 1), lambda l, k: (l, 0, 0))
        grid = (3, nblk)
        kernel = _streamed_kernel
        scratch = [pltpu.VMEM((c, n_pad), jnp.bfloat16),          # tmp
                   pltpu.VMEM((c, n_pad), jnp.float32)]           # H^T
        # layer l needs every slab of layer l-1 through the resident H scratch
        # -> neither axis is megacore-parallel.
        dim_sem = ("arbitrary", "arbitrary")

    in_specs = [
        a_spec,                                    # A_hat (resident or streamed)
        _const((f_in, n_pad)),                     # X^T
        _const((c, f_in)),                         # W1^T
        _const((c, c)),                            # W2^T
        _const((c, c)),                            # W3^T
        b_spec,                                    # stacked b1/b2/b3
        _const((n_pad, g_pad)),                    # P^T
        _const((nhid, c)), _const((nhid, 1)),      # W4^T, b4
        _const((nout, nhid)), _const((nout, 1)),   # W5^T, b5
    ]
    out_spec = pl.BlockSpec((nout, g_pad), lambda *_: (0, 0))

    a_reads = 1 if use_resident else 3
    flops = (2 * f_in * c * n_pad + 2 * 2 * c * c * n_pad      # W pre-multiplies
             + 3 * 2 * c * n_pad * n_pad                       # A_hat propagation
             + 2 * c * n_pad * g_pad                           # mean pool
             + 2 * c * nhid * g_pad + 2 * nhid * nout * g_pad)  # MLP head
    bytes_accessed = (a_reads * n_pad * n_pad * 2
                      + (f_in + g_pad) * n_pad * 2
                      + 2 * (c * f_in + 2 * c * c + nhid * c + nout * nhid)
                      + 4 * (3 * c + nhid + nout) + nout * g_pad * 4)

    out_t = pl.pallas_call(
        kernel,
        out_shape=jax.ShapeDtypeStruct((nout, g_pad), jnp.float32),
        grid=grid,
        in_specs=in_specs,
        out_specs=out_spec,
        scratch_shapes=scratch,
        compiler_params=pltpu.CompilerParams(
            dimension_semantics=dim_sem,
            vmem_limit_bytes=budget,
        ),
        cost_estimate=pl.CostEstimate(
            flops=flops, transcendentals=0, bytes_accessed=bytes_accessed),
    )(a_bf, xt, w1t, w2t, w3t, b_stack, pt, w4t, b4c, w5t, b5c)

    return out_t.T[:g_cnt]    # (G, nout)


# ----------------------------- plain-JAX glue --------------------------------


def build_norm_adj(edge_index, num_nodes):
    """A_hat = D^{-1/2} (A + I) D^{-1/2}, matching torch_geometric GCNConv."""
    src, dst = edge_index
    a = jnp.zeros((num_nodes, num_nodes), jnp.float32)
    a = a.at[dst, src].add(1.0)
    a = a + jnp.eye(num_nodes, dtype=jnp.float32)
    deg = a.sum(axis=1)
    dinv = jnp.where(deg > 0, 1.0 / jnp.sqrt(deg), 0.0)
    return dinv[:, None] * a * dinv[None, :]


def build_pool_matrix(batch, num_graphs):
    onehot = (batch[None, :] == jnp.arange(num_graphs)[:, None]).astype(jnp.float32)
    counts = onehot.sum(axis=1, keepdims=True)
    return onehot / jnp.maximum(counts, 1.0)


def init_params(key, num_node_features, nout, nhid, graph_hidden_channels):
    ks = jax.random.split(key, 5)

    def dense(k, fan_in, fan_out):
        kw, kb = jax.random.split(k)
        scale = 1.0 / jnp.sqrt(fan_in)
        w = jax.random.uniform(kw, (fan_in, fan_out), jnp.float32, -scale, scale)
        b = jax.random.uniform(kb, (fan_out,), jnp.float32, -scale, scale)
        return w, b

    w1, b1 = dense(ks[0], num_node_features, graph_hidden_channels)
    w2, b2 = dense(ks[1], graph_hidden_channels, graph_hidden_channels)
    w3, b3 = dense(ks[2], graph_hidden_channels, graph_hidden_channels)
    w4, b4 = dense(ks[3], graph_hidden_channels, nhid)
    w5, b5 = dense(ks[4], nhid, nout)
    return (w1, b1, w2, b2, w3, b3, w4, b4, w5, b5)


def reference_forward(a_hat, x, p, params):
    """Pure-JAX reference mirroring the kernel's bf16-input / f32-accumulate math."""
    w1, b1, w2, b2, w3, b3, w4, b4, w5, b5 = params

    def mxdot(lhs, rhs):
        return jnp.dot(lhs.astype(jnp.bfloat16), rhs.astype(jnp.bfloat16),
                       preferred_element_type=jnp.float32)

    h = jnp.maximum(mxdot(a_hat, mxdot(x, w1)) + b1, 0.0)
    h = jnp.maximum(mxdot(a_hat, mxdot(h, w2)) + b2, 0.0)
    h = mxdot(a_hat, mxdot(h, w3)) + b3
    g = mxdot(p, h)
    g = jnp.maximum(mxdot(g, w4) + b4, 0.0)
    return mxdot(g, w5) + b5


if __name__ == "__main__":
    num_node_features = 8
    graph_hidden_channels = 32
    nhid = 32
    nout = 16

    key = jax.random.PRNGKey(0)
    k_params, k_x1, k_x2 = jax.random.split(key, 3)
    params = init_params(k_params, num_node_features, nout, nhid,
                         graph_hidden_channels)

    def make_batch(k_x, num_graphs, nodes_per_graph):
        num_nodes = num_graphs * nodes_per_graph
        x = jax.random.normal(k_x, (num_nodes, num_node_features), jnp.float32)
        src, dst = [], []
        for gi in range(num_graphs):
            base = gi * nodes_per_graph
            for i in range(nodes_per_graph - 1):
                src += [base + i, base + i + 1]
                dst += [base + i + 1, base + i]
        edge_index = jnp.array([src, dst], dtype=jnp.int32)
        batch = jnp.repeat(jnp.arange(num_graphs, dtype=jnp.int32),
                           nodes_per_graph)
        a_hat = build_norm_adj(edge_index, num_nodes)
        p = build_pool_matrix(batch, num_graphs)
        return a_hat, x, p

    # 1) resident-A fast path: 2 graphs x 8 nodes (N_pad = 128, grid=(3,)).
    a_hat, x, p = make_batch(k_x1, 2, 8)
    out = jax.block_until_ready(graph_encoder_forward(a_hat, x, p, params))
    ref = reference_forward(a_hat, x, p, params)
    assert out.shape == (2, nout)
    assert jnp.allclose(out, ref, atol=1e-2, rtol=1e-2), (
        float(jnp.max(jnp.abs(out - ref))))

    # 2) streamed-A path (forced): 2 graphs x 80 nodes -> N_pad = 256, 2 slabs.
    a_hat, x, p = make_batch(k_x2, 2, 80)
    out = jax.block_until_ready(
        graph_encoder_forward(a_hat, x, p, params, tile_n=128,
                              force_streaming=True))
    ref = reference_forward(a_hat, x, p, params)
    assert out.shape == (2, nout)
    assert jnp.allclose(out, ref, atol=1e-2, rtol=1e-2), (
        float(jnp.max(jnp.abs(out - ref))))

    # TODO(synk): self.ln (LayerNorm) is defined in __init__ but never used in
    # forward(), so it is intentionally not implemented.
    # TODO(synk): a block-sparse / CSR-gather A_hat path (scalar-prefetched
    # neighbor offsets) would be the next step for genuinely sparse graphs.
    print("KERNEL_OK")
</pallas_src>

<mosaic_0001>
module attributes {stable_mosaic.version = 11 : i64} {
  func.func @_resident_kernel(%arg0: i32, %arg1: memref<128x128xbf16, #tpu.memory_space<vmem>>, %arg2: memref<8x128xbf16, #tpu.memory_space<vmem>>, %arg3: memref<32x8xbf16, #tpu.memory_space<vmem>>, %arg4: memref<32x32xbf16, #tpu.memory_space<vmem>>, %arg5: memref<32x32xbf16, #tpu.memory_space<vmem>>, %arg6: memref<1x32x1xf32, #tpu.memory_space<vmem>>, %arg7: memref<128x128xbf16, #tpu.memory_space<vmem>>, %arg8: memref<32x32xbf16, #tpu.memory_space<vmem>>, %arg9: memref<32x1xf32, #tpu.memory_space<vmem>>, %arg10: memref<16x32xbf16, #tpu.memory_space<vmem>>, %arg11: memref<16x1xf32, #tpu.memory_space<vmem>>, %arg12: memref<16x128xf32, #tpu.memory_space<vmem>>, %arg13: memref<32x128xf32, #tpu.memory_space<vmem>>) attributes {dimension_semantics = [#tpu.dimension_semantics<arbitrary>], iteration_bounds = array<i64: 3>, scalar_prefetch = 0 : i64, scratch_operands = 1 : i64, tpu.core_type = #tpu.core_type<tc>, window_params = [{pipeline_mode = #tpu.pipeline_mode<synchronous>, transform_indices = @transform_0, window_bounds = array<i64: 128, 128>}, {pipeline_mode = #tpu.pipeline_mode<synchronous>, transform_indices = @transform_1, window_bounds = array<i64: 8, 128>}, {pipeline_mode = #tpu.pipeline_mode<synchronous>, transform_indices = @transform_2, window_bounds = array<i64: 32, 8>}, {pipeline_mode = #tpu.pipeline_mode<synchronous>, transform_indices = @transform_3, window_bounds = array<i64: 32, 32>}, {pipeline_mode = #tpu.pipeline_mode<synchronous>, transform_indices = @transform_4, window_bounds = array<i64: 32, 32>}, {transform_indices = @transform_5, window_bounds = array<i64: 1, 32, 1>}, {pipeline_mode = #tpu.pipeline_mode<synchronous>, transform_indices = @transform_6, window_bounds = array<i64: 128, 128>}, {pipeline_mode = #tpu.pipeline_mode<synchronous>, transform_indices = @transform_7, window_bounds = array<i64: 32, 32>}, {pipeline_mode = #tpu.pipeline_mode<synchronous>, transform_indices = @transform_8, window_bounds = array<i64: 32, 1>}, {pipeline_mode = #tpu.pipeline_mode<synchronous>, transform_indices = @transform_9, window_bounds = array<i64: 16, 32>}, {pipeline_mode = #tpu.pipeline_mode<synchronous>, transform_indices = @transform_10, window_bounds = array<i64: 16, 1>}, {pipeline_mode = #tpu.pipeline_mode<synchronous>, transform_indices = @transform_11, window_bounds = array<i64: 16, 128>}]} {
    %c0_i32 = arith.constant 0 : i32
    %0 = arith.cmpi eq, %arg0, %c0_i32 : i32
    %1 = arith.extui %0 : i1 to i32
    %c0_i32_0 = arith.constant 0 : i32
    %2 = arith.cmpi ne, %1, %c0_i32_0 : i32
    scf.if %2 {
      %c0_12 = arith.constant 0 : index
      %c0_13 = arith.constant 0 : index
      %22 = vector.load %arg3[%c0_12, %c0_13] : memref<32x8xbf16, #tpu.memory_space<vmem>>, vector<32x8xbf16>
      %c0_14 = arith.constant 0 : index
      %c0_15 = arith.constant 0 : index
      %23 = vector.load %arg2[%c0_14, %c0_15] : memref<8x128xbf16, #tpu.memory_space<vmem>>, vector<8x128xbf16>
      %cst_16 = arith.constant dense<0.000000e+00> : vector<32x128xf32>
      %24 = tpu.matmul %22, %23, %cst_16 {dimension_numbers = #tpu.dot_dimension_numbers<[1], [0], [0], [1], [0, 0, 1, 1], [], []>} : vector<32x8xbf16>, vector<8x128xbf16>, vector<32x128xf32> -> vector<32x128xf32>
      %25 = arith.truncf %24 : vector<32x128xf32> to vector<32x128xbf16>
      %c0_17 = arith.constant 0 : index
      %c0_18 = arith.constant 0 : index
      %26 = vector.load %arg1[%c0_17, %c0_18] : memref<128x128xbf16, #tpu.memory_space<vmem>>, vector<128x128xbf16>
      %cst_19 = arith.constant dense<0.000000e+00> : vector<32x128xf32>
      %27 = tpu.matmul %25, %26, %cst_19 {dimension_numbers = #tpu.dot_dimension_numbers<[1], [0], [0], [1], [0, 0, 1, 1], [], []>} : vector<32x128xbf16>, vector<128x128xbf16>, vector<32x128xf32> -> vector<32x128xf32>
      %c0_20 = arith.constant 0 : index
      %c0_21 = arith.constant 0 : index
      %28 = vector.load %arg13[%c0_20, %c0_21] : memref<32x128xf32, #tpu.memory_space<vmem>>, vector<32x128xf32>
      tpu.vector_store %arg13[%c0_20, %c0_21], %27 {strides = array<i32>} : memref<32x128xf32, #tpu.memory_space<vmem>>, vector<32x128xf32>,
    } else {
    }
    %c1_i32 = arith.constant 1 : i32
    %3 = arith.cmpi eq, %arg0, %c1_i32 : i32
    %4 = arith.extui %3 : i1 to i32
    %c0_i32_1 = arith.constant 0 : i32
    %5 = arith.cmpi ne, %4, %c0_i32_1 : i32
    scf.if %5 {
      %c0_12 = arith.constant 0 : index
      %c0_13 = arith.constant 0 : index
      %22 = vector.load %arg4[%c0_12, %c0_13] : memref<32x32xbf16, #tpu.memory_space<vmem>>, vector<32x32xbf16>
      %c0_14 = arith.constant 0 : index
      %c0_15 = arith.constant 0 : index
      %23 = vector.load %arg13[%c0_14, %c0_15] : memref<32x128xf32, #tpu.memory_space<vmem>>, vector<32x128xf32>
      %24 = arith.truncf %23 : vector<32x128xf32> to vector<32x128xbf16>
      %cst_16 = arith.constant dense<0.000000e+00> : vector<32x128xf32>
      %25 = tpu.matmul %22, %24, %cst_16 {dimension_numbers = #tpu.dot_dimension_numbers<[1], [0], [0], [1], [0, 0, 1, 1], [], []>} : vector<32x32xbf16>, vector<32x128xbf16>, vector<32x128xf32> -> vector<32x128xf32>
      %26 = arith.truncf %25 : vector<32x128xf32> to vector<32x128xbf16>
      %c0_17 = arith.constant 0 : index
      %c0_18 = arith.constant 0 : index
      %27 = vector.load %arg1[%c0_17, %c0_18] : memref<128x128xbf16, #tpu.memory_space<vmem>>, vector<128x128xbf16>
      %cst_19 = arith.constant dense<0.000000e+00> : vector<32x128xf32>
      %28 = tpu.matmul %26, %27, %cst_19 {dimension_numbers = #tpu.dot_dimension_numbers<[1], [0], [0], [1], [0, 0, 1, 1], [], []>} : vector<32x128xbf16>, vector<128x128xbf16>, vector<32x128xf32> -> vector<32x128xf32>
      %c0_20 = arith.constant 0 : index
      %c0_21 = arith.constant 0 : index
      %29 = vector.load %arg13[%c0_20, %c0_21] : memref<32x128xf32, #tpu.memory_space<vmem>>, vector<32x128xf32>
      tpu.vector_store %arg13[%c0_20, %c0_21], %28 {strides = array<i32>} : memref<32x128xf32, #tpu.memory_space<vmem>>, vector<32x128xf32>,
    } else {
    }
    %c2_i32 = arith.constant 2 : i32
    %6 = arith.cmpi eq, %arg0, %c2_i32 : i32
    %7 = arith.extui %6 : i1 to i32
    %c0_i32_2 = arith.constant 0 : i32
    %8 = arith.cmpi ne, %7, %c0_i32_2 : i32
    scf.if %8 {
      %c0_12 = arith.constant 0 : index
      %c0_13 = arith.constant 0 : index
      %22 = vector.load %arg5[%c0_12, %c0_13] : memref<32x32xbf16, #tpu.memory_space<vmem>>, vector<32x32xbf16>
      %c0_14 = arith.constant 0 : index
      %c0_15 = arith.constant 0 : index
      %23 = vector.load %arg13[%c0_14, %c0_15] : memref<32x128xf32, #tpu.memory_space<vmem>>, vector<32x128xf32>
      %24 = arith.truncf %23 : vector<32x128xf32> to vector<32x128xbf16>
      %cst_16 = arith.constant dense<0.000000e+00> : vector<32x128xf32>
      %25 = tpu.matmul %22, %24, %cst_16 {dimension_numbers = #tpu.dot_dimension_numbers<[1], [0], [0], [1], [0, 0, 1, 1], [], []>} : vector<32x32xbf16>, vector<32x128xbf16>, vector<32x128xf32> -> vector<32x128xf32>
      %26 = arith.truncf %25 : vector<32x128xf32> to vector<32x128xbf16>
      %c0_17 = arith.constant 0 : index
      %c0_18 = arith.constant 0 : index
      %27 = vector.load %arg1[%c0_17, %c0_18] : memref<128x128xbf16, #tpu.memory_space<vmem>>, vector<128x128xbf16>
      %cst_19 = arith.constant dense<0.000000e+00> : vector<32x128xf32>
      %28 = tpu.matmul %26, %27, %cst_19 {dimension_numbers = #tpu.dot_dimension_numbers<[1], [0], [0], [1], [0, 0, 1, 1], [], []>} : vector<32x128xbf16>, vector<128x128xbf16>, vector<32x128xf32> -> vector<32x128xf32>
      %c0_20 = arith.constant 0 : index
      %c0_21 = arith.constant 0 : index
      %29 = vector.load %arg13[%c0_20, %c0_21] : memref<32x128xf32, #tpu.memory_space<vmem>>, vector<32x128xf32>
      tpu.vector_store %arg13[%c0_20, %c0_21], %28 {strides = array<i32>} : memref<32x128xf32, #tpu.memory_space<vmem>>, vector<32x128xf32>,
    } else {
    }
    %c0 = arith.constant 0 : index
    %c0_3 = arith.constant 0 : index
    %9 = vector.load %arg13[%c0, %c0_3] : memref<32x128xf32, #tpu.memory_space<vmem>>, vector<32x128xf32>
    %c0_4 = arith.constant 0 : index
    %c0_5 = arith.constant 0 : index
    %c0_6 = arith.constant 0 : index
    %10 = vector.load %arg6[%c0_4, %c0_5, %c0_6] : memref<1x32x1xf32, #tpu.memory_space<vmem>>, vector<1x32x1xf32>
    %11 = vector.shape_cast %10 : vector<1x32x1xf32> to vector<32x1xf32>
    %12 = vector.broadcast %11 : vector<32x1xf32> to vector<32x128xf32>
    %13 = arith.addf %9, %12 : vector<32x128xf32>
    %c2_i32_7 = arith.constant 2 : i32
    %14 = arith.cmpi slt, %arg0, %c2_i32_7 : i32
    %cst = arith.constant 0.000000e+00 : f32
    %15 = vector.broadcast %cst : f32 to vector<32x128xf32>
    %16 = arith.maximumf %13, %15 : vector<32x128xf32>
    %17 = arith.select %14, %16, %13 : vector<32x128xf32>
    %c0_8 = arith.constant 0 : index
    %c0_9 = arith.constant 0 : index
    %18 = vector.load %arg13[%c0_8, %c0_9] : memref<32x128xf32, #tpu.memory_space<vmem>>, vector<32x128xf32>
    tpu.vector_store %arg13[%c0_8, %c0_9], %17 {strides = array<i32>} : memref<32x128xf32, #tpu.memory_space<vmem>>, vector<32x128xf32>,
    %c2_i32_10 = arith.constant 2 : i32
    %19 = arith.cmpi eq, %arg0, %c2_i32_10 : i32
    %20 = arith.extui %19 : i1 to i32
    %c0_i32_11 = arith.constant 0 : i32
    %21 = arith.cmpi ne, %20, %c0_i32_11 : i32
    scf.if %21 {
      %c0_12 = arith.constant 0 : index
      %c0_13 = arith.constant 0 : index
      %22 = vector.load %arg13[%c0_12, %c0_13] : memref<32x128xf32, #tpu.memory_space<vmem>>, vector<32x128xf32>
      %23 = arith.truncf %22 : vector<32x128xf32> to vector<32x128xbf16>
      %c0_14 = arith.constant 0 : index
      %c0_15 = arith.constant 0 : index
      %24 = vector.load %arg7[%c0_14, %c0_15] : memref<128x128xbf16, #tpu.memory_space<vmem>>, vector<128x128xbf16>
      %cst_16 = arith.constant dense<0.000000e+00> : vector<32x128xf32>
      %25 = tpu.matmul %23, %24, %cst_16 {dimension_numbers = #tpu.dot_dimension_numbers<[1], [0], [0], [1], [0, 0, 1, 1], [], []>} : vector<32x128xbf16>, vector<128x128xbf16>, vector<32x128xf32> -> vector<32x128xf32>
      %c0_17 = arith.constant 0 : index
      %c0_18 = arith.constant 0 : index
      %26 = vector.load %arg8[%c0_17, %c0_18] : memref<32x32xbf16, #tpu.memory_space<vmem>>, vector<32x32xbf16>
      %27 = arith.truncf %25 : vector<32x128xf32> to vector<32x128xbf16>
      %cst_19 = arith.constant dense<0.000000e+00> : vector<32x128xf32>
      %28 = tpu.matmul %26, %27, %cst_19 {dimension_numbers = #tpu.dot_dimension_numbers<[1], [0], [0], [1], [0, 0, 1, 1], [], []>} : vector<32x32xbf16>, vector<32x128xbf16>, vector<32x128xf32> -> vector<32x128xf32>
      %c0_20 = arith.constant 0 : index
      %c0_21 = arith.constant 0 : index
      %29 = vector.load %arg9[%c0_20, %c0_21] : memref<32x1xf32, #tpu.memory_space<vmem>>, vector<32x1xf32>
      %30 = vector.broadcast %29 : vector<32x1xf32> to vector<32x128xf32>
      %31 = arith.addf %28, %30 : vector<32x128xf32>
      %cst_22 = arith.constant 0.000000e+00 : f32
      %32 = vector.broadcast %cst_22 : f32 to vector<32x128xf32>
      %33 = arith.maximumf %31, %32 : vector<32x128xf32>
      %c0_23 = arith.constant 0 : index
      %c0_24 = arith.constant 0 : index
      %34 = vector.load %arg10[%c0_23, %c0_24] : memref<16x32xbf16, #tpu.memory_space<vmem>>, vector<16x32xbf16>
      %35 = arith.truncf %33 : vector<32x128xf32> to vector<32x128xbf16>
      %cst_25 = arith.constant dense<0.000000e+00> : vector<16x128xf32>
      %36 = tpu.matmul %34, %35, %cst_25 {dimension_numbers = #tpu.dot_dimension_numbers<[1], [0], [0], [1], [0, 0, 1, 1], [], []>} : vector<16x32xbf16>, vector<32x128xbf16>, vector<16x128xf32> -> vector<16x128xf32>
      %c0_26 = arith.constant 0 : index
      %c0_27 = arith.constant 0 : index
      %37 = vector.load %arg11[%c0_26, %c0_27] : memref<16x1xf32, #tpu.memory_space<vmem>>, vector<16x1xf32>
      %38 = vector.broadcast %37 : vector<16x1xf32> to vector<16x128xf32>
      %39 = arith.addf %36, %38 : vector<16x128xf32>
      %c0_28 = arith.constant 0 : index
      %c0_29 = arith.constant 0 : index
      %40 = vector.load %arg12[%c0_28, %c0_29] : memref<16x128xf32, #tpu.memory_space<vmem>>, vector<16x128xf32>
      tpu.vector_store %arg12[%c0_28, %c0_29], %39 {strides = array<i32>} : memref<16x128xf32, #tpu.memory_space<vmem>>, vector<16x128xf32>,
    } else {
    }
    return
  }
  func.func @transform_0(%arg0: i32) -> (i32, i32) {
    %c0_i32 = arith.constant 0 : i32
    %c0_i32_0 = arith.constant 0 : i32
    %c0_i32_1 = arith.constant 0 : i32
    return %c0_i32, %c0_i32_0 : i32, i32
  }
  func.func @transform_1(%arg0: i32) -> (i32, i32) {
    %c0_i32 = arith.constant 0 : i32
    %c0_i32_0 = arith.constant 0 : i32
    %c0_i32_1 = arith.constant 0 : i32
    return %c0_i32, %c0_i32_0 : i32, i32
  }
  func.func @transform_2(%arg0: i32) -> (i32, i32) {
    %c0_i32 = arith.constant 0 : i32
    %c0_i32_0 = arith.constant 0 : i32
    %c0_i32_1 = arith.constant 0 : i32
    return %c0_i32, %c0_i32_0 : i32, i32
  }
  func.func @transform_3(%arg0: i32) -> (i32, i32) {
    %c0_i32 = arith.constant 0 : i32
    %c0_i32_0 = arith.constant 0 : i32
    %c0_i32_1 = arith.constant 0 : i32
    return %c0_i32, %c0_i32_0 : i32, i32
  }
  func.func @transform_4(%arg0: i32) -> (i32, i32) {
    %c0_i32 = arith.constant 0 : i32
    %c0_i32_0 = arith.constant 0 : i32
    %c0_i32_1 = arith.constant 0 : i32
    return %c0_i32, %c0_i32_0 : i32, i32
  }
  func.func @transform_5(%arg0: i32) -> (i32, i32, i32) {
    %c0_i32 = arith.constant 0 : i32
    %c0_i32_0 = arith.constant 0 : i32
    %c0_i32_1 = arith.constant 0 : i32
    return %arg0, %c0_i32, %c0_i32_0 : i32, i32, i32
  }
  func.func @transform_6(%arg0: i32) -> (i32, i32) {
    %c0_i32 = arith.constant 0 : i32
    %c0_i32_0 = arith.constant 0 : i32
    %c0_i32_1 = arith.constant 0 : i32
    return %c0_i32, %c0_i32_0 : i32, i32
  }
  func.func @transform_7(%arg0: i32) -> (i32, i32) {
    %c0_i32 = arith.constant 0 : i32
    %c0_i32_0 = arith.constant 0 : i32
    %c0_i32_1 = arith.constant 0 : i32
    return %c0_i32, %c0_i32_0 : i32, i32
  }
  func.func @transform_8(%arg0: i32) -> (i32, i32) {
    %c0_i32 = arith.constant 0 : i32
    %c0_i32_0 = arith.constant 0 : i32
    %c0_i32_1 = arith.constant 0 : i32
    return %c0_i32, %c0_i32_0 : i32, i32
  }
  func.func @transform_9(%arg0: i32) -> (i32, i32) {
    %c0_i32 = arith.constant 0 : i32
    %c0_i32_0 = arith.constant 0 : i32
    %c0_i32_1 = arith.constant 0 : i32
    return %c0_i32, %c0_i32_0 : i32, i32
  }
  func.func @transform_10(%arg0: i32) -> (i32, i32) {
    %c0_i32 = arith.constant 0 : i32
    %c0_i32_0 = arith.constant 0 : i32
    %c0_i32_1 = arith.constant 0 : i32
    return %c0_i32, %c0_i32_0 : i32, i32
  }
  func.func @transform_11(%arg0: i32) -> (i32, i32) {
    %c0_i32 = arith.constant 0 : i32
    %c0_i32_0 = arith.constant 0 : i32
    %c0_i32_1 = arith.constant 0 : i32
    return %c0_i32, %c0_i32_0 : i32, i32
  }
}

</mosaic_0001>

<bundles_post_ra>
// kernel: tpu_custom_call.1
= control target key start
LH: loop header
LB: loop body
LE: loop exit
PB: predicated region body
PF: predicated region fallthrough
CT: control target
= control target key end

     0   :  { %16 = vsyncpa [#allocation4], 0  ;;  %s2150_s0 = inlined_call_operand.vmem [shape: bf16[128,128], index: 0, kind: input, shape index: {}]   ;;  %s2151_s1 = inlined_call_operand.hbm [shape: bf16[8,128], index: 1, kind: input, shape index: {}]   ;;  %s2152_s2 = inlined_call_operand.vmem [shape: bf16[32,8], index: 2, kind: input, shape index: {}]   ;;  %s2153_s3 = inlined_call_operand.vmem [shape: bf16[32,32], index: 3, kind: input, shape index: {}]   ;;  %s2154_s4 = inlined_call_operand.vmem [shape: bf16[32,32], index: 4, kind: input, shape index: {}]   ;;  %s2155_s5 = inlined_call_operand.vmem [shape: f32[3,32,1], index: 5, kind: input, shape index: {}]   ;;  %s2156_s6 = inlined_call_operand.vmem [shape: bf16[128,128], index: 6, kind: input, shape index: {}]   ;;  %s2157_s7 = inlined_call_operand.vmem [shape: bf16[32,32], index: 7, kind: input, shape index: {}]   ;;  %s2158_s8 = inlined_call_operand.vmem [shape: f32[32,1], index: 8, kind: input, shape index: {}]   ;;  %s2159_s9 = inlined_call_operand.hbm [shape: bf16[16,32], index: 9, kind: input, shape index: {}]   ;;  %s2160_s10 = inlined_call_operand.vmem [shape: f32[16,1], index: 10, kind: input, shape index: {}]   ;;  %s2161_s11 = inlined_call_operand.hbm [shape: f32[16,128], index: 11, kind: output, shape index: {}]  }
   0x1   :  { %17 = vsyncpa [#allocation7], 0 }
   0x2   :  { %18 = vsyncpa [#allocation5], 0  ;;  %s1907_s17 = smov 0  }
   0x3 LB: > { %s1913_s18 = sadd.s32 4294967295, %s1834_s17   ;;  %p1406_p0 = scmp.ge.s32.totalorder %s1834_s17, 1  ;;  %s1834_s17 = sphi %s1907_s17, %s24_s17  }
   0x4   : > { %p286_p1 = scmp.lt.s32.totalorder %s1834_s17, 4  ;;  %p2162_p3 = scmp.eq.s32.totalorder %s1913_s18, 0 }
   0x5   : > { %s1836_s19 = smov [#allocation3]   ;;  %s1837_s22 = smov [#allocation6]  }
   0x6   : > { %s302_s20 = sshll.u32 %s1836_s19, 4  ;;  %p1919_p4 = pnand %p1406_p0, %p286_p1  ;;  %s303_s20 = int_to_ptr.vmem [resolvable:$true] %s302_s20 }
   0x7   : > { %s330_s23 = sshll.u32 %s1837_s22, 4  ;;  %s1751_s25 = scalar_lea.vmem %s303_s20, 64  ;;  %s331_s23 = int_to_ptr.vmem [resolvable:$true] %s330_s23 }
   0x8   : > { %s2164_s21 = scalar_select %p1919_p4, 1, 0 }
   0x9   : > { %p1663_p5 = pneg %p1919_p4  ;;  %p1752_p8 = scmp.ne.s32.totalorder %s303_s20, %s1751_s25 }
   0xa   : > { %p1759_p11 = scmp.lt.s32.totalorder %s303_s20, %s303_s20  ;;  %p1760_p12 = scmp.lt.s32.totalorder %s1751_s25, %s1751_s25 }
   0xb   : > { %p1927_p6 = pnand %p2162_p3, %p1663_p5 }
   0xc   : > { %p1761_p13 = por %p1760_p12, %p1759_p11 }
   0xd   : > { %p1742_p7 = pneg %p1927_p6 }
   0xf   : > { %p1754_p9 = pnand %p1752_p8, %p1742_p7 }
  0x11   : > { %p1755_p10 = pneg %p1754_p9 }
  0x13   : > { %p1762_p0 = pnand %p1761_p13, %p1755_p10 }
  0x15   : > { %1765 = shalt.err (!%p1762_p0)
}
  0x16   : > { %1666 = dma.hbm_to_vmem [thread:$0]  (!%p1927_p6), %s2151_s1, 64, %s303_s20, [#allocation4]  }
  0x17   : > { %s1777_s28 = scalar_lea.vmem %s331_s23, 128  ;;  %p1785_p8 = scmp.lt.s32.totalorder %s331_s23, %s331_s23 }
  0x18   : > { %p1778_p1 = scmp.ne.s32.totalorder %s331_s23, %s1777_s28  ;;  %p1786_p9 = scmp.lt.s32.totalorder %s1777_s28, %s1777_s28 }
  0x1a   : > { %p1780_p5 = pnand %p1778_p1, %p1742_p7  ;;  %p1787_p3 = por %p1786_p9, %p1785_p8 }
  0x1c   : > { %p1781_p2 = pneg %p1780_p5 }
  0x1e   : > { %p1788_p4 = pnand %p1787_p3, %p1781_p2 }
  0x20   : > { %1791 = shalt.err (!%p1788_p4)
}
  0x21   : > { %s1838_s29 = smov 64   ;;  %s1839_s30 = smov 4  }
  0x22   : > { %1669 = dma.hbm_to_vmem [thread:$0]  (!%p1927_p6), %s2159_s9, 128, %s331_s23, [#allocation7], %s1838_s29, %s1838_s29, %s1839_s30  }
  0x23   : > { %p2166_p10 = scmp.ne.s32.totalorder %s2164_s21, 0 }
  0x24   : > { %p2167_p11 = scmp.eq.s32.totalorder (!%p2166_p10), %s1913_s18, 0 }
  0x25   : > { %357 = sbr.rel (%p2166_p10) target bundleno = 2104 (0x838), region = 64 }
  0x2a   : > { %1821 = dma.done.wait (%p2167_p11), [#allocation4], 64   ;;  %p2168_p7 = pmov %p2167_p11 }
  0x2c   : > { %1823 = vsyncadd (%p2168_p7), [#allocation4], 4294967232  ;;  %p2169_p2 = pmov %p2168_p7 }
  0x2e   : > { %1825 = dma.done.wait (%p2169_p2), [#allocation7], 128   ;;  %p2170_p3 = pmov %p2169_p2 }
  0x2f   : > { %p396_p4 = scmp.lt.s32.totalorder %s1913_s18, 2  ;;  %p2171_p6 = scmp.ne.s32.totalorder %s1913_s18, 0 }
  0x30   : > { %1827 = vsyncadd (%p2170_p3), [#allocation7], 4294967168 }
  0x31   : > { %s397_s14 = scalar_select %p396_p4, %s1913_s18, 2 }
  0x32   : > { %405 = sbr.rel (%p2171_p6) target bundleno = 462 (0x1ce), region = 76 }
  0x33   : > { %s1473_s15 = sshll.u32 %s397_s14, 5 }
  0x34   : > { %s1966_s20 = scalar_lea.vmem %s2155_s5, %s1473_s15 }
  0x37   : > { %v410_v0 = vld [vmem:[#allocation3] sm:$0xf]  ;;  %vm428_vm0 = vcmask 1043456   ;;  %vm421_vm1 = vcmask 64512   ;;  %v1696_v3 = vld [vmem:[%s2152_s2 + $0x8] sm:$0xff]   ;;  %v1697_v4 = vld [vmem:[%s2150_s0 + $0x38] sm:$0xff]  }
  0x38   : > { %v1695_v1 = vld [vmem:[%s2152_s2] sm:$0xff]   ;;  %1650 = vmatprep.subr.msk.bf16.mxu0 %vm428_vm0, %v410_v0  ;;  %v430_v2 = vsel %vm428_vm0, %v410_v0, 0  ;;  %v1698_v5 = vld [vmem:[%s2150_s0 + $0x30] sm:$0xff]   ;;  %1538 = vmatprep.subr.bf16.mxu1 %v1697_v4  ;;  %v1699_v6 = vld [vmem:[%s2150_s0 + $0x28] sm:$0xff]  }
  0x39   : > { %1533 = vmatpush3.bf16.msra.mxu0 %v430_v2  ;;  %1534 = vmatprep.mubr.msk.bf16.mxu0 %vm421_vm1, %v1695_v1  ;;  %v1700_v7 = vld [vmem:[%s2150_s0 + $0x20] sm:$0xff]   ;;  %v1701_v8 = vld [vmem:[%s2150_s0 + $0x18] sm:$0xff]   ;;  %v1702_v9 = vld [vmem:[%s2150_s0 + $0x10] sm:$0xff]  }
  0x3a   : > { %1539 = vmatpush3.bf16.msra.mxu1 %v1697_v4  ;;  %v1703_v10 = vld [vmem:[%s2150_s0 + $0x8] sm:$0xff]   ;;  %v1704_v11 = vld [vmem:[%s2150_s0] sm:$0xff]  }
  0x3b   : > { %1540 = vmatprep.subr.bf16.mxu1 %v1698_v5 }
  0x3c   : > { %1535 = vmatmul.mubr.msk.bf16.vlgmr.msra.gmra.mxu0 %vm421_vm1, %v1696_v3 }
  0x3e   : > { %1541 = vmatpush3.bf16.msra.mxu1 %v1698_v5 }
  0x3f   : > { %1542 = vmatprep.subr.bf16.mxu1 %v1699_v6 }
  0x42   : > { %1543 = vmatpush3.bf16.msra.mxu1 %v1699_v6 }
  0x43   : > { %1544 = vmatprep.subr.bf16.mxu1 %v1700_v7 }
  0x46   : > { %1545 = vmatpush3.bf16.msra.mxu1 %v1700_v7 }
  0x47   : > { %1546 = vmatprep.subr.bf16.mxu1 %v1701_v8 }
  0x4a   : > { %1547 = vmatpush3.bf16.msra.mxu1 %v1701_v8 }
  0x4b   : > { %1548 = vmatprep.subr.bf16.mxu1 %v1702_v9 }
  0x4e   : > { %1549 = vmatpush3.bf16.msra.mxu1 %v1702_v9 }
  0x4f   : > { %1550 = vmatprep.subr.bf16.mxu1 %v1703_v10 }
  0x52   : > { %1551 = vmatpush3.bf16.msra.mxu1 %v1703_v10 }
  0x53   : > { %1552 = vmatprep.subr.bf16.mxu1 %v1704_v11 }
  0x56   : > { %1553 = vmatpush3.bf16.msra.mxu1 %v1704_v11 }
  0xfc   : > { %v1536_v12 = vpop.f32.mrf.mxu0 }
  0xfe   : > { %v466_v13 = vpop.f32.mrf.mxu0 }
 0x100   : > { %v1537_v14 = vpop.f32.mrf.mxu0 }
 0x101   : > { %v482_v17 = vpack.c.bf16 %v1537_v14, %v1536_v12 }
 0x102   : > { %v469_v15 = vpop.f32.mrf.mxu0 }
 0x103   : > { %v481_v16 = vpack.c.bf16 %v469_v15, %v466_v13 }
 0x105   : > { %1554 = vmatprep.mubr.bf16.mxu1 %v481_v16 }
 0x106   : > { %1555 = vmatmul.mubr.bf16.vlgmr.msra.gmra.mxu1 %v482_v17 }
 0x1c6   : > { %v1556_v18 = vpop.f32.mrf.mxu1 }
 0x1c7   : > { %598 = vst [vmem:[#allocation2 + $0x18] sm:$0xff] %v1556_v18 }
 0x1c8   : > { %v581_v19 = vpop.f32.mrf.mxu1 }
 0x1c9   : > { %596 = vst [vmem:[#allocation2 + $0x10] sm:$0xff] %v581_v19 }
 0x1ca   : > { %v1557_v20 = vpop.f32.mrf.mxu1 }
 0x1cb   : > { %599 = vst [vmem:[#allocation2 + $0x8] sm:$0xff] %v1557_v20 }
 0x1cc   : > { %v584_v21 = vpop.f32.mrf.mxu1 }
 0x1cd   : > { %597 = vst [vmem:[#allocation2] sm:$0xff] %v584_v21 }
 0x1ce PF: > { %p1428_p12 = scmp.ne.s32.totalorder %s1913_s18, 1 }
 0x1d0   : > { %603 = sbr.rel (%p1428_p12) target bundleno = 882 (0x372), region = 80 }
 0x1d5   : > { %v610_v22 = vld [vmem:[#allocation2 + $0x18] sm:$0xff]  ;;  %v611_v23 = vld [vmem:[#allocation2 + $0x8] sm:$0xff]  ;;  %v608_v24 = vld [vmem:[#allocation2 + $0x10] sm:$0xff]  ;;  %vm624_vm2 = vcmask 261120  }
 0x1d6   : > { %v613_v25 = vpack.c.bf16 %v611_v23, %v610_v22  ;;  %v609_v26 = vld [vmem:[#allocation2] sm:$0xff]  ;;  %v1707_v29 = vld [vmem:[%s2150_s0 + $0x38] sm:$0xff]   ;;  %v1708_v30 = vld [vmem:[%s2150_s0 + $0x30] sm:$0xff]  }
 0x1d7   : > { %v612_v27 = vpack.c.bf16 %v609_v26, %v608_v24  ;;  %v1705_v28 = vld [vmem:[%s2153_s3] sm:$0xff]   ;;  %1566 = vmatprep.subr.bf16.mxu1 %v1707_v29  ;;  %v1706_v31 = vld [vmem:[%s2153_s3 + $0x8] sm:$0xff]   ;;  %v1711_v34 = vld [vmem:[%s2150_s0 + $0x18] sm:$0xff]  }
 0x1d8   : > { %1558 = vmatprep.subr.bf16.mxu0 %v613_v25  ;;  %1562 = vmatprep.mubr.msk.bf16.mxu0 %vm624_vm2, %v1705_v28  ;;  %v1709_v32 = vld [vmem:[%s2150_s0 + $0x28] sm:$0xff]   ;;  %v1710_v33 = vld [vmem:[%s2150_s0 + $0x20] sm:$0xff]   ;;  %v1712_v35 = vld [vmem:[%s2150_s0 + $0x10] sm:$0xff]  }
 0x1d9   : > { %1559 = vmatpush3.bf16.msra.mxu0 %v613_v25  ;;  %1567 = vmatpush3.bf16.msra.mxu1 %v1707_v29  ;;  %v1713_v36 = vld [vmem:[%s2150_s0 + $0x8] sm:$0xff]   ;;  %v1714_v37 = vld [vmem:[%s2150_s0] sm:$0xff]  }
 0x1da   : > { %1560 = vmatprep.subr.bf16.mxu0 %v612_v27  ;;  %1568 = vmatprep.subr.bf16.mxu1 %v1708_v30 }
 0x1dd   : > { %1561 = vmatpush3.bf16.msra.mxu0 %v612_v27  ;;  %1569 = vmatpush3.bf16.msra.mxu1 %v1708_v30 }
 0x1de   : > { %1570 = vmatprep.subr.bf16.mxu1 %v1709_v32 }
 0x1e0   : > { %1563 = vmatmul.mubr.msk.bf16.vlgmr.msra.gmra.mxu0 %vm624_vm2, %v1706_v31 }
 0x1e1   : > { %1571 = vmatpush3.bf16.msra.mxu1 %v1709_v32 }
 0x1e2   : > { %1572 = vmatprep.subr.bf16.mxu1 %v1710_v33 }
 0x1e5   : > { %1573 = vmatpush3.bf16.msra.mxu1 %v1710_v33 }
 0x1e6   : > { %1574 = vmatprep.subr.bf16.mxu1 %v1711_v34 }
 0x1e9   : > { %1575 = vmatpush3.bf16.msra.mxu1 %v1711_v34 }
 0x1ea   : > { %1576 = vmatprep.subr.bf16.mxu1 %v1712_v35 }
 0x1ed   : > { %1577 = vmatpush3.bf16.msra.mxu1 %v1712_v35 }
 0x1ee   : > { %1578 = vmatprep.subr.bf16.mxu1 %v1713_v36 }
 0x1f1   : > { %1579 = vmatpush3.bf16.msra.mxu1 %v1713_v36 }
 0x1f2   : > { %1580 = vmatprep.subr.bf16.mxu1 %v1714_v37 }
 0x1f5   : > { %1581 = vmatpush3.bf16.msra.mxu1 %v1714_v37 }
 0x2a0   : > { %v1564_v38 = vpop.f32.mrf.mxu0 }
 0x2a2   : > { %v665_v39 = vpop.f32.mrf.mxu0 }
 0x2a4   : > { %v1565_v40 = vpop.f32.mrf.mxu0 }
 0x2a5   : > { %v681_v43 = vpack.c.bf16 %v1565_v40, %v1564_v38 }
 0x2a6   : > { %v668_v41 = vpop.f32.mrf.mxu0 }
 0x2a7   : > { %v680_v42 = vpack.c.bf16 %v668_v41, %v665_v39 }
 0x2a9   : > { %1582 = vmatprep.mubr.bf16.mxu1 %v680_v42 }
 0x2aa   : > { %1583 = vmatmul.mubr.bf16.vlgmr.msra.gmra.mxu1 %v681_v43 }
 0x36a   : > { %v1584_v44 = vpop.f32.mrf.mxu1 }
 0x36b   : > { %797 = vst [vmem:[#allocation2 + $0x18] sm:$0xff] %v1584_v44 }
 0x36c   : > { %v780_v45 = vpop.f32.mrf.mxu1 }
 0x36d   : > { %795 = vst [vmem:[#allocation2 + $0x10] sm:$0xff] %v780_v45 }
 0x36e   : > { %v1585_v46 = vpop.f32.mrf.mxu1 }
 0x36f   : > { %798 = vst [vmem:[#allocation2 + $0x8] sm:$0xff] %v1585_v46 }
 0x370   : > { %v783_v47 = vpop.f32.mrf.mxu1 }
 0x371   : > { %796 = vst [vmem:[#allocation2] sm:$0xff] %v783_v47 }
 0x372 PF: > { %p1441_p13 = scmp.ne.s32.totalorder %s1913_s18, 2 }
 0x374   : > { %802 = sbr.rel (%p1441_p13) target bundleno = 1302 (0x516), region = 84 }
 0x379   : > { %v809_v48 = vld [vmem:[#allocation2 + $0x18] sm:$0xff]  ;;  %v810_v49 = vld [vmem:[#allocation2 + $0x8] sm:$0xff]  ;;  %v807_v50 = vld [vmem:[#allocation2 + $0x10] sm:$0xff]  ;;  %vm823_vm3 = vcmask 261120  }
 0x37a   : > { %v812_v51 = vpack.c.bf16 %v810_v49, %v809_v48  ;;  %v808_v52 = vld [vmem:[#allocation2] sm:$0xff]  ;;  %v1717_v55 = vld [vmem:[%s2150_s0 + $0x38] sm:$0xff]   ;;  %v1718_v56 = vld [vmem:[%s2150_s0 + $0x30] sm:$0xff]  }
 0x37b   : > { %v811_v53 = vpack.c.bf16 %v808_v52, %v807_v50  ;;  %v1715_v54 = vld [vmem:[%s2154_s4] sm:$0xff]   ;;  %1594 = vmatprep.subr.bf16.mxu1 %v1717_v55  ;;  %v1716_v57 = vld [vmem:[%s2154_s4 + $0x8] sm:$0xff]   ;;  %v1721_v60 = vld [vmem:[%s2150_s0 + $0x18] sm:$0xff]  }
 0x37c   : > { %1586 = vmatprep.subr.bf16.mxu0 %v812_v51  ;;  %1590 = vmatprep.mubr.msk.bf16.mxu0 %vm823_vm3, %v1715_v54  ;;  %v1719_v58 = vld [vmem:[%s2150_s0 + $0x28] sm:$0xff]   ;;  %v1720_v59 = vld [vmem:[%s2150_s0 + $0x20] sm:$0xff]   ;;  %v1722_v61 = vld [vmem:[%s2150_s0 + $0x10] sm:$0xff]  }
 0x37d   : > { %1587 = vmatpush3.bf16.msra.mxu0 %v812_v51  ;;  %1595 = vmatpush3.bf16.msra.mxu1 %v1717_v55  ;;  %v1723_v62 = vld [vmem:[%s2150_s0 + $0x8] sm:$0xff]   ;;  %v1724_v63 = vld [vmem:[%s2150_s0] sm:$0xff]  }
 0x37e   : > { %1588 = vmatprep.subr.bf16.mxu0 %v811_v53  ;;  %1596 = vmatprep.subr.bf16.mxu1 %v1718_v56 }
 0x381   : > { %1589 = vmatpush3.bf16.msra.mxu0 %v811_v53  ;;  %1597 = vmatpush3.bf16.msra.mxu1 %v1718_v56 }
 0x382   : > { %1598 = vmatprep.subr.bf16.mxu1 %v1719_v58 }
 0x384   : > { %1591 = vmatmul.mubr.msk.bf16.vlgmr.msra.gmra.mxu0 %vm823_vm3, %v1716_v57 }
 0x385   : > { %1599 = vmatpush3.bf16.msra.mxu1 %v1719_v58 }
 0x386   : > { %1600 = vmatprep.subr.bf16.mxu1 %v1720_v59 }
 0x389   : > { %1601 = vmatpush3.bf16.msra.mxu1 %v1720_v59 }
 0x38a   : > { %1602 = vmatprep.subr.bf16.mxu1 %v1721_v60 }
 0x38d   : > { %1603 = vmatpush3.bf16.msra.mxu1 %v1721_v60 }
 0x38e   : > { %1604 = vmatprep.subr.bf16.mxu1 %v1722_v61 }
 0x391   : > { %1605 = vmatpush3.bf16.msra.mxu1 %v1722_v61 }
 0x392   : > { %1606 = vmatprep.subr.bf16.mxu1 %v1723_v62 }
 0x395   : > { %1607 = vmatpush3.bf16.msra.mxu1 %v1723_v62 }
 0x396   : > { %1608 = vmatprep.subr.bf16.mxu1 %v1724_v63 }
 0x399   : > { %1609 = vmatpush3.bf16.msra.mxu1 %v1724_v63 }
 0x444   : > { %v1592_v0 = vpop.f32.mrf.mxu0 }
 0x446   : > { %v864_v1 = vpop.f32.mrf.mxu0 }
 0x448   : > { %v1593_v2 = vpop.f32.mrf.mxu0 }
 0x449   : > { %v880_v5 = vpack.c.bf16 %v1593_v2, %v1592_v0 }
 0x44a   : > { %v867_v3 = vpop.f32.mrf.mxu0 }
 0x44b   : > { %v879_v4 = vpack.c.bf16 %v867_v3, %v864_v1 }
 0x44d   : > { %1610 = vmatprep.mubr.bf16.mxu1 %v879_v4 }
 0x44e   : > { %1611 = vmatmul.mubr.bf16.vlgmr.msra.gmra.mxu1 %v880_v5 }
 0x50e   : > { %v1612_v6 = vpop.f32.mrf.mxu1 }
 0x50f   : > { %996 = vst [vmem:[#allocation2 + $0x18] sm:$0xff] %v1612_v6 }
 0x510   : > { %v979_v7 = vpop.f32.mrf.mxu1 }
 0x511   : > { %994 = vst [vmem:[#allocation2 + $0x10] sm:$0xff] %v979_v7 }
 0x512   : > { %v1613_v8 = vpop.f32.mrf.mxu1 }
 0x513   : > { %997 = vst [vmem:[#allocation2 + $0x8] sm:$0xff] %v1613_v8 }
 0x514   : > { %v982_v9 = vpop.f32.mrf.mxu1 }
 0x515   : > { %995 = vst [vmem:[#allocation2] sm:$0xff] %v982_v9 }
 0x516 PF: > { %v1004_v10 = vld [vmem:[%s1966_s20 + $0x10] sm:$0xff]  ;;  %v1002_v11 = vld [vmem:[%s1966_s20] sm:$0xff]  ;;  %v1840_v12 = vmov 0   ;;  %v1005_v13 = vld [vmem:[%s1966_s20 + $0x18] sm:$0xff]  ;;  %s1035_s14 = scalar_select %p396_p4, 1, 0 }
 0x517   : > { %1726 = vset.pattern.permute.xlu1 %v1840_v12  ;;  %1725 = vset.pattern.permute.xlu0 %v1840_v12  ;;  %v1003_v14 = vld [vmem:[%s1966_s20 + $0x8] sm:$0xff]  ;;  %v1000_v15 = vld [vmem:[#allocation2 + $0x18] sm:$0xff] }
 0x518   : > { %1018 = vperm.xlu1 %1726, %v1004_v10   ;;  %1008 = vperm.xlu0 %1725, %v1002_v11   ;;  %v998_v16 = vld [vmem:[#allocation2 + $0x10] sm:$0xff]  ;;  %v1036_v17 = vstv %s1035_s14 }
 0x519   : > { %vm2070_vm4 = vcmp.eq.s32.totalorder %v1036_v17, 1 }
 0x51a   : > { %v1001_v23 = vld [vmem:[#allocation2 + $0x8] sm:$0xff] }
 0x51c   : > { %1023 = vperm.xlu1 %1726, %v1005_v13   ;;  %1013 = vperm.xlu0 %1725, %v1003_v14   ;;  %v999_v24 = vld [vmem:[#allocation2] sm:$0xff] }
 0x593   : > { %v1019_v18 = vpop.permute.xlu1 %1018  ;;  %v1009_v19 = vpop.permute.xlu0 %1008 }
 0x594   : > { %v1028_v20 = vadd.f32 %v1019_v18, %v1000_v15  ;;  %v1026_v21 = vadd.f32 %v1009_v19, %v998_v16 }
 0x596   : > { %v1033_v25 = vmax.f32 %v1028_v20, 0.0  ;;  %v1031_v26 = vmax.f32 %v1026_v21, 0.0 }
 0x597   : > { %v1024_v27 = vpop.permute.xlu1 %1023  ;;  %v1014_v28 = vpop.permute.xlu0 %1013 }
 0x598   : > { %v1040_v29 = vsel %vm2070_vm4, %v1033_v25, %v1028_v20  ;;  %v1038_v30 = vsel %vm2070_vm4, %v1031_v26, %v1026_v21  ;;  %v1029_v31 = vadd.f32 %v1024_v27, %v1001_v23  ;;  %v1027_v32 = vadd.f32 %v1014_v28, %v999_v24 }
 0x599   : > { %1044 = vst [vmem:[#allocation2 + $0x18] sm:$0xff] %v1040_v29  ;;  %1042 = vst [vmem:[#allocation2 + $0x10] sm:$0xff] %v1038_v30  ;;  %1048 = sbr.rel (%p1441_p13) target bundleno = 2088 (0x828), region = 88 }
 0x59a   : > { %v1034_v33 = vmax.f32 %v1029_v31, 0.0  ;;  %v1032_v34 = vmax.f32 %v1027_v32, 0.0 }
 0x59c   : > { %v1041_v35 = vsel %vm2070_vm4, %v1034_v33, %v1029_v31  ;;  %v1039_v36 = vsel %vm2070_vm4, %v1032_v34, %v1027_v32 }
 0x59d   : > { %1045 = vst [vmem:[#allocation2 + $0x8] sm:$0xff] %v1041_v35  ;;  %1043 = vst [vmem:[#allocation2] sm:$0xff] %v1039_v36 }
 0x59e   : > { %v1729_v37 = vld [vmem:[%s2156_s6 + $0x38] sm:$0xff]   ;;  %v1730_v38 = vld [vmem:[%s2156_s6 + $0x30] sm:$0xff]   ;;  %v1731_v39 = vld [vmem:[%s2156_s6 + $0x28] sm:$0xff]   ;;  %vm1208_vm5 = vcmask 261120   ;;  %v1841_v54 = vmov 0   ;;  %v1842_v2 = vmov 0.0  }
 0x59f   : > { %1614 = vmatprep.subr.bf16.mxu0 %v1729_v37  ;;  %v1732_v40 = vld [vmem:[%s2156_s6 + $0x20] sm:$0xff]   ;;  %v1733_v44 = vld [vmem:[%s2156_s6 + $0x18] sm:$0xff]   ;;  %v1734_v45 = vld [vmem:[%s2156_s6 + $0x10] sm:$0xff]   ;;  %1727 = vset.pattern.permute.xlu0 %v1841_v54  ;;  %vm1843_vm6 = vmmov 0  }
 0x5a0   : > { %1615 = vmatpush3.bf16.msra.mxu0 %v1729_v37  ;;  %v1049_v41 = vld [vmem:[#allocation2 + $0x10] sm:$0xff]  ;;  %v1735_v46 = vld [vmem:[%s2156_s6 + $0x8] sm:$0xff]   ;;  %v1736_v47 = vld [vmem:[%s2156_s6] sm:$0xff]   ;;  %1728 = vset.pattern.permute.xlu1 %v1841_v54 }
 0x5a1   : > { %1616 = vmatprep.subr.bf16.mxu0 %v1730_v38  ;;  %v1051_v48 = vld [vmem:[#allocation2 + $0x18] sm:$0xff]  ;;  %v1737_v51 = vld [vmem:[%s2157_s7] sm:$0xff]   ;;  %v1176_v52 = vld [vmem:[%s2158_s8 + $0x10] sm:$0xff] }
 0x5a2   : > { %1638 = vmatprep.mubr.msk.bf16.mxu1 %vm1208_vm5, %v1737_v51  ;;  %v1174_v53 = vld [vmem:[%s2158_s8] sm:$0xff]  ;;  %1190 = vperm.xlu0 %1727, %v1176_v52   ;;  %v1177_v55 = vld [vmem:[%s2158_s8 + $0x18] sm:$0xff]  ;;  %v1175_v56 = vld [vmem:[%s2158_s8 + $0x8] sm:$0xff] }
 0x5a3   : > { %1180 = vperm.xlu1 %1728, %v1174_v53   ;;  %v1272_v57 = vld [vmem:[%s2160_s10] sm:$0xff]  ;;  %v1273_v58 = vld [vmem:[%s2160_s10 + $0x8] sm:$0xff] }
 0x5a4   : > { %1617 = vmatpush3.bf16.msra.mxu0 %v1730_v38  ;;  %v1050_v42 = vld [vmem:[#allocation2] sm:$0xff]  ;;  %v1052_v49 = vld [vmem:[#allocation2 + $0x8] sm:$0xff] }
 0x5a5   : > { %1618 = vmatprep.subr.bf16.mxu0 %v1731_v39  ;;  %v1053_v43 = vpack.c.bf16 %v1050_v42, %v1049_v41  ;;  %v1054_v50 = vpack.c.bf16 %v1052_v49, %v1051_v48  ;;  %v1738_v1 = vld [vmem:[%s2157_s7 + $0x8] sm:$0xff]  }
 0x5a6   : > { %1195 = vperm.xlu0 %1727, %v1177_v55   ;;  %v1739_v21 = vld [vmem:[#allocation6] sm:$0xff]  }
 0x5a7   : > { %1630 = vmatprep.mubr.bf16.mxu0 %v1053_v43  ;;  %1185 = vperm.xlu1 %1728, %v1175_v56  }
 0x5a8   : > { %1619 = vmatpush3.bf16.msra.mxu0 %v1731_v39 }
 0x5a9   : > { %1620 = vmatprep.subr.bf16.mxu0 %v1732_v40 }
 0x5aa   : > { %1276 = vperm.xlu0 %1727, %v1272_v57  }
 0x5ab   : > { %1281 = vperm.xlu1 %1728, %v1273_v58  }
 0x5ac   : > { %1621 = vmatpush3.bf16.msra.mxu0 %v1732_v40 }
 0x5ad   : > { %1622 = vmatprep.subr.bf16.mxu0 %v1733_v44 }
 0x5b0   : > { %1623 = vmatpush3.bf16.msra.mxu0 %v1733_v44 }
 0x5b1   : > { %1624 = vmatprep.subr.bf16.mxu0 %v1734_v45 }
 0x5b4   : > { %1625 = vmatpush3.bf16.msra.mxu0 %v1734_v45 }
 0x5b5   : > { %1626 = vmatprep.subr.bf16.mxu0 %v1735_v46 }
 0x5b8   : > { %1627 = vmatpush3.bf16.msra.mxu0 %v1735_v46 }
 0x5b9   : > { %1628 = vmatprep.subr.bf16.mxu0 %v1736_v47 }
 0x5bc   : > { %1629 = vmatpush3.bf16.msra.mxu0 %v1736_v47 }
 0x5bf   : > { %1631 = vmatmul.mubr.bf16.vlgmr.msra.gmra.mxu0 %v1054_v50 }
 0x61d   : > { %v1191_v3 = vpop.permute.xlu0 %1190 }
 0x61e   : > { %v1181_v4 = vpop.permute.xlu1 %1180 }
 0x621   : > { %v1196_v8 = vpop.permute.xlu0 %1195 }
 0x622   : > { %v1186_v11 = vpop.permute.xlu1 %1185 }
 0x625   : > { %v1277_v22 = vpop.permute.xlu0 %1276 }
 0x626   : > { %v1282_v26 = vpop.permute.xlu1 %1281 }
 0x67f   : > { %v1632_v59 = vpop.f32.mrf.mxu0 }
 0x681   : > { %v1153_v60 = vpop.f32.mrf.mxu0 }
 0x683   : > { %v1633_v61 = vpop.f32.mrf.mxu0 }
 0x684   : > { %v1173_v62 = vpack.c.bf16 %v1633_v61, %v1632_v59 }
 0x685   : > { %v1156_v63 = vpop.f32.mrf.mxu0 }
 0x686   : > { %v1172_v0 = vpack.c.bf16 %v1156_v63, %v1153_v60  ;;  %1634 = vmatprep.subr.bf16.mxu1 %v1173_v62 }
 0x687   : > { %1635 = vmatpush3.bf16.msra.mxu1 %v1173_v62 }
 0x688   : > { %1636 = vmatprep.subr.bf16.mxu1 %v1172_v0 }
 0x68b   : > { %1637 = vmatpush3.bf16.msra.mxu1 %v1172_v0 }
 0x68c   : > { %1642 = vmatprep.subr.bf16.mxu1 %v1842_v2 }
 0x68e   : > { %1639 = vmatmul.mubr.msk.bf16.vlgmr.msra.gmra.mxu1 %vm1208_vm5, %v1738_v1 }
 0x68f   : > { %1646 = vmatprep.mubr.msk.bf16.mxu1 %vm1843_vm6, %v1842_v2 }
 0x74e   : > { %v1640_v5 = vpop.f32.mrf.mxu1 }
 0x74f   : > { %v1258_v7 = vadd.f32 %v1640_v5, %v1191_v3 }
 0x750   : > { %v1249_v6 = vpop.f32.mrf.mxu1 }
 0x751   : > { %v1266_v13 = vmax.f32 %v1258_v7, 0.0  ;;  %v1250_v14 = vadd.f32 %v1249_v6, %v1181_v4 }
 0x752   : > { %v1641_v9 = vpop.f32.mrf.mxu1 }
 0x753   : > { %v1261_v10 = vadd.f32 %v1641_v9, %v1196_v8  ;;  %v1264_v19 = vmax.f32 %v1250_v14, 0.0 }
 0x754   : > { %v1252_v12 = vpop.f32.mrf.mxu1 }
 0x755   : > { %v1267_v15 = vmax.f32 %v1261_v10, 0.0  ;;  %v1253_v16 = vadd.f32 %v1252_v12, %v1186_v11 }
 0x757   : > { %v1271_v17 = vpack.c.bf16 %v1267_v15, %v1266_v13  ;;  %v1265_v18 = vmax.f32 %v1253_v16, 0.0 }
 0x759   : > { %1643 = vmatpush3.bf16.msra.mxu1 %v1271_v17  ;;  %v1270_v20 = vpack.c.bf16 %v1265_v18, %v1264_v19 }
 0x75a   : > { %1644 = vmatprep.subr.bf16.mxu1 %v1842_v2 }
 0x75d   : > { %1645 = vmatpush3.bf16.msra.mxu1 %v1270_v20 }
 0x760   : > { %1647 = vmatmul.mubr.msk.bf16.vlgmr.msra.gmra.mxu1 %vm1208_vm5, %v1739_v21 }
 0x820   : > { %v1326_v23 = vpop.f32.mrf.mxu1 }
 0x821   : > { %v1327_v24 = vadd.f32 %v1326_v23, %v1277_v22 }
 0x822   : > { %v1648_v25 = vpop.f32.mrf.mxu1 }
 0x823   : > { %1333 = vst [vmem:[#allocation8] sm:$0xff] %v1327_v24 }
 0x824   : > { %v1329_v27 = vpop.f32.mrf.mxu1 }
 0x825   : > { %v1330_v28 = vadd.f32 %v1329_v27, %v1282_v26 }
 0x826   : > { %v1649_v29 = vpop.f32.mrf.mxu1 }
 0x827   : > { %1334 = vst [vmem:[#allocation8 + $0x8] sm:$0xff] %v1330_v28 }
 0x828 PF: > { %p1674_p0 = scmp.eq.s32.totalorder %s1913_s18, 2  ;;  %s1844_s13 = smov [#allocation8]  }
 0x829   : > { %s1341_s14 = sshll.u32 %s1844_s13, 4  ;;  %s1342_s14 = int_to_ptr.vmem [resolvable:$true] %s1341_s14 }
 0x82a   : > { %s1792_s20 = scalar_lea.vmem %s1342_s14, 256  ;;  %p1799_p9 = scmp.lt.s32.totalorder %s1342_s14, %s1342_s14 }
 0x82b   : > { %p1793_p1 = scmp.ne.s32.totalorder %s1342_s14, %s1792_s20  ;;  %p1800_p10 = scmp.lt.s32.totalorder %s1792_s20, %s1792_s20 }
 0x82d   : > { %p1794_p5 = pnand %p1793_p1, %p1674_p0  ;;  %p1801_p11 = por %p1800_p10, %p1799_p9 }
 0x82f   : > { %p1795_p8 = pneg %p1794_p5 }
 0x831   : > { %p1802_p7 = pnand %p1801_p11, %p1795_p8 }
 0x833   : > { %1805 = shalt.err (!%p1802_p7)
}
 0x834   : > { %s1845_s15 = smov 128   ;;  %s1846_s16 = smov 8  }
 0x835   : > { %1660 = dma.vmem_to_hbm [thread:$0]  (%p1674_p0), %s1342_s14, 256, %s2161_s11, [#allocation5], %s1845_s15, %s1845_s15, %s1846_s16  }
 0x836   : > { %1829 = dma.done.wait (%p1674_p0), [#allocation5], 256  }
 0x837   : > { %1831 = vsyncadd (%p1674_p0), [#allocation5], 4294967040 }
 0x838 PF: > { %s24_s17 = sadd.s32 1, %s1834_s17  }
 0x839   : > { %p21_p2 = scmp.ge.s32.totalorder %s24_s17, 5  }
 0x83b   :  { %23 = sbr.rel (!%p21_p2) target bundleno = 3 (0x3), region = 116 }
 0x840   :  { %1357 = vsyncpa [#allocation4], 1 }
 0x841   :  { %1359 = vsyncpa [#allocation4 + $0x1], 1 }
 0x842   :  { %1360 = vsyncpa [#allocation7], 1 }
 0x843   :  { %1361 = vsyncpa [#allocation5], 1 }
 0x844   :  { %1363 = vsyncpa [#allocation5 + $0x1], 1 }

</bundles_post_ra>
